<compile_context>
chip_gen: v7x
topology: tpu7x:2x2x1
jax: 0.10.0
libtpu: 0.0.40
codegen_flags: <defaults>
</compile_context>

<pallas_src>
import jax
import jax.numpy as jnp
from jax.experimental import pallas as pl
from jax.experimental.pallas import tpu as pltpu


def ffnn_kernel(emb_ref, w1_ref, b1_ref, w2_ref, b2_ref, out_ref, h_ref):
    # emb_ref: (B_tile, K_pad) bf16      w1_ref: (K_pad, H_pad) bf16
    # b1_ref:  (1, H_pad) f32            w2_ref: (H_pad, V_tile) bf16
    # b2_ref:  (1, V_tile) f32           out_ref: (B_tile, V_tile) f32
    # h_ref:   (B_tile, H_pad) bf16 VMEM scratch (fc1 activation cache)
    j = pl.program_id(1)

    # fc1 + ReLU only once per batch tile (vocab axis is the inner grid loop).
    @pl.when(j == 0)
    def _():
        h = jnp.dot(emb_ref[...], w1_ref[...],
                    preferred_element_type=jnp.float32)
        h = h + b1_ref[...]           # bias add in f32
        h = jnp.maximum(h, 0.0)       # ReLU in f32
        h_ref[...] = h.astype(h_ref.dtype)

    # Dropout(p=0.2) in eval mode == identity.
    logits = jnp.dot(h_ref[...], w2_ref[...],
                     preferred_element_type=jnp.float32)
    logits = logits + b2_ref[...]
    out_ref[...] = logits.astype(out_ref.dtype)


def _round_up(a, m):
    return (a + m - 1) // m * m


def ffnn_forward(x_ids, emb_table, w1, b1, w2, b2, *, b_tile=256, v_tile=512):
    """Forward pass of FFNNLanguageModel.

    x_ids:     (B, n_gram) int32 token ids
    emb_table: (vocab, emb_dim) f32
    w1:        (n_gram*emb_dim, hidden) f32,  b1: (hidden,) f32
    w2:        (hidden, vocab) f32,           b2: (vocab,) f32
    returns logits (B, vocab) f32
    """
    B, n_gram = x_ids.shape
    emb_dim = emb_table.shape[1]
    K = n_gram * emb_dim
    hidden = w1.shape[1]
    vocab = w2.shape[1]

    # Glue: embedding lookup + flatten (== self.embedding(x).view(B, -1)).
    x_emb = jnp.take(emb_table, x_ids, axis=0).reshape(B, K)

    # Lane-dense padding (zeros -> exact results, sliced off afterwards).
    K_pad = _round_up(K, 128)
    H_pad = _round_up(hidden, 128)
    V_pad = _round_up(vocab, 128)

    B_tile = min(b_tile, _round_up(B, 8))
    B_pad = _round_up(B, B_tile)
    V_tile = min(v_tile, V_pad)
    V_pad = _round_up(V_pad, V_tile)

    bf16 = jnp.bfloat16
    x_p = jnp.zeros((B_pad, K_pad), bf16).at[:B, :K].set(x_emb.astype(bf16))
    w1_p = jnp.zeros((K_pad, H_pad), bf16).at[:K, :hidden].set(w1.astype(bf16))
    b1_p = jnp.zeros((1, H_pad), jnp.float32).at[0, :hidden].set(b1)
    w2_p = jnp.zeros((H_pad, V_pad), bf16).at[:hidden, :vocab].set(w2.astype(bf16))
    b2_p = jnp.zeros((1, V_pad), jnp.float32).at[0, :vocab].set(b2)

    grid = (B_pad // B_tile, V_pad // V_tile)

    out_p = pl.pallas_call(
        ffnn_kernel,
        out_shape=jax.ShapeDtypeStruct((B_pad, V_pad), jnp.float32),
        grid_spec=pltpu.PrefetchScalarGridSpec(
            num_scalar_prefetch=0,
            grid=grid,
            in_specs=[
                pl.BlockSpec((B_tile, K_pad), lambda i, j: (i, 0)),   # x_emb
                pl.BlockSpec((K_pad, H_pad), lambda i, j: (0, 0)),    # w1 (resident)
                pl.BlockSpec((1, H_pad), lambda i, j: (0, 0)),        # b1 (resident)
                pl.BlockSpec((H_pad, V_tile), lambda i, j: (0, j)),   # w2 tile
                pl.BlockSpec((1, V_tile), lambda i, j: (0, j)),       # b2 tile
            ],
            out_specs=pl.BlockSpec((B_tile, V_tile), lambda i, j: (i, j)),
            scratch_shapes=[pltpu.VMEM((B_tile, H_pad), bf16)],       # fc1 cache
        ),
        compiler_params=pltpu.CompilerParams(
            dimension_semantics=("parallel", "arbitrary"),
        ),
    )(x_p, w1_p, b1_p, w2_p, b2_p)

    return out_p[:B, :vocab]


def reference_forward(x_ids, emb_table, w1, b1, w2, b2):
    B = x_ids.shape[0]
    x = jnp.take(emb_table, x_ids, axis=0).reshape(B, -1)
    h = jnp.maximum(x @ w1 + b1, 0.0)
    return h @ w2 + b2


if __name__ == "__main__":
    vocab_size = 64
    embedding_dim = 16
    hidden_dim = 32
    n_gram = 4
    batch = 8

    key = jax.random.PRNGKey(0)
    k_ids, k_emb, k_w1, k_b1, k_w2, k_b2 = jax.random.split(key, 6)

    x_ids = jax.random.randint(k_ids, (batch, n_gram), 0, vocab_size, dtype=jnp.int32)
    emb_table = jax.random.normal(k_emb, (vocab_size, embedding_dim), jnp.float32) * 0.1
    w1 = jax.random.normal(k_w1, (n_gram * embedding_dim, hidden_dim), jnp.float32) * 0.1
    b1 = jax.random.normal(k_b1, (hidden_dim,), jnp.float32) * 0.1
    w2 = jax.random.normal(k_w2, (hidden_dim, vocab_size), jnp.float32) * 0.1
    b2 = jax.random.normal(k_b2, (vocab_size,), jnp.float32) * 0.1

    out = ffnn_forward(x_ids, emb_table, w1, b1, w2, b2)
    out = jax.block_until_ready(out)

    ref = reference_forward(x_ids, emb_table, w1, b1, w2, b2)
    assert out.shape == (batch, vocab_size)
    # bf16 weights with f32 accumulation -> loosened tolerance vs f32 reference.
    assert jnp.allclose(out, ref, atol=5e-2, rtol=5e-2), "mismatch vs reference"

    print("KERNEL_OK")
</pallas_src>

<mosaic_0001>
module attributes {stable_mosaic.version = 11 : i64} {
  func.func @ffnn_kernel(%arg0: i32, %arg1: i32, %arg2: memref<8x128xbf16, #tpu.memory_space<vmem>>, %arg3: memref<128x128xbf16, #tpu.memory_space<vmem>>, %arg4: memref<1x128xf32, #tpu.memory_space<vmem>>, %arg5: memref<128x128xbf16, #tpu.memory_space<vmem>>, %arg6: memref<1x128xf32, #tpu.memory_space<vmem>>, %arg7: memref<8x128xf32, #tpu.memory_space<vmem>>, %arg8: memref<8x128xbf16, #tpu.memory_space<vmem>>) attributes {dimension_semantics = [#tpu.dimension_semantics<parallel>, #tpu.dimension_semantics<arbitrary>], iteration_bounds = array<i64: 1, 1>, scalar_prefetch = 0 : i64, scratch_operands = 1 : i64, tpu.core_type = #tpu.core_type<tc>, window_params = [{transform_indices = @transform_0, window_bounds = array<i64: 8, 128>}, {pipeline_mode = #tpu.pipeline_mode<synchronous>, transform_indices = @transform_1, window_bounds = array<i64: 128, 128>}, {pipeline_mode = #tpu.pipeline_mode<synchronous>, transform_indices = @transform_2, window_bounds = array<i64: 1, 128>}, {transform_indices = @transform_3, window_bounds = array<i64: 128, 128>}, {transform_indices = @transform_4, window_bounds = array<i64: 1, 128>}, {transform_indices = @transform_5, window_bounds = array<i64: 8, 128>}]} {
    %c0_i32 = arith.constant 0 : i32
    %0 = arith.cmpi eq, %arg1, %c0_i32 : i32
    %1 = arith.extui %0 : i1 to i32
    %c0_i32_0 = arith.constant 0 : i32
    %2 = arith.cmpi ne, %1, %c0_i32_0 : i32
    scf.if %2 {
      %c0_8 = arith.constant 0 : index
      %c0_9 = arith.constant 0 : index
      %10 = vector.load %arg2[%c0_8, %c0_9] : memref<8x128xbf16, #tpu.memory_space<vmem>>, vector<8x128xbf16>
      %c0_10 = arith.constant 0 : index
      %c0_11 = arith.constant 0 : index
      %11 = vector.load %arg3[%c0_10, %c0_11] : memref<128x128xbf16, #tpu.memory_space<vmem>>, vector<128x128xbf16>
      %cst_12 = arith.constant dense<0.000000e+00> : vector<8x128xf32>
      %12 = tpu.matmul %10, %11, %cst_12 {dimension_numbers = #tpu.dot_dimension_numbers<[1], [0], [0], [1], [0, 0, 1, 1], [], []>} : vector<8x128xbf16>, vector<128x128xbf16>, vector<8x128xf32> -> vector<8x128xf32>
      %c0_13 = arith.constant 0 : index
      %c0_14 = arith.constant 0 : index
      %13 = vector.load %arg4[%c0_13, %c0_14] : memref<1x128xf32, #tpu.memory_space<vmem>>, vector<1x128xf32>
      %14 = vector.broadcast %13 : vector<1x128xf32> to vector<8x128xf32>
      %15 = arith.addf %12, %14 : vector<8x128xf32>
      %cst_15 = arith.constant 0.000000e+00 : f32
      %16 = vector.broadcast %cst_15 : f32 to vector<8x128xf32>
      %17 = arith.maximumf %15, %16 : vector<8x128xf32>
      %18 = arith.truncf %17 : vector<8x128xf32> to vector<8x128xbf16>
      %c0_16 = arith.constant 0 : index
      %c0_17 = arith.constant 0 : index
      %19 = vector.load %arg8[%c0_16, %c0_17] : memref<8x128xbf16, #tpu.memory_space<vmem>>, vector<8x128xbf16>
      tpu.vector_store %arg8[%c0_16, %c0_17], %18 {strides = array<i32>} : memref<8x128xbf16, #tpu.memory_space<vmem>>, vector<8x128xbf16>,
    } else {
    }
    %c0 = arith.constant 0 : index
    %c0_1 = arith.constant 0 : index
    %3 = vector.load %arg8[%c0, %c0_1] : memref<8x128xbf16, #tpu.memory_space<vmem>>, vector<8x128xbf16>
    %c0_2 = arith.constant 0 : index
    %c0_3 = arith.constant 0 : index
    %4 = vector.load %arg5[%c0_2, %c0_3] : memref<128x128xbf16, #tpu.memory_space<vmem>>, vector<128x128xbf16>
    %cst = arith.constant dense<0.000000e+00> : vector<8x128xf32>
    %5 = tpu.matmul %3, %4, %cst {dimension_numbers = #tpu.dot_dimension_numbers<[1], [0], [0], [1], [0, 0, 1, 1], [], []>} : vector<8x128xbf16>, vector<128x128xbf16>, vector<8x128xf32> -> vector<8x128xf32>
    %c0_4 = arith.constant 0 : index
    %c0_5 = arith.constant 0 : index
    %6 = vector.load %arg6[%c0_4, %c0_5] : memref<1x128xf32, #tpu.memory_space<vmem>>, vector<1x128xf32>
    %7 = vector.broadcast %6 : vector<1x128xf32> to vector<8x128xf32>
    %8 = arith.addf %5, %7 : vector<8x128xf32>
    %c0_6 = arith.constant 0 : index
    %c0_7 = arith.constant 0 : index
    %9 = vector.load %arg7[%c0_6, %c0_7] : memref<8x128xf32, #tpu.memory_space<vmem>>, vector<8x128xf32>
    tpu.vector_store %arg7[%c0_6, %c0_7], %8 {strides = array<i32>} : memref<8x128xf32, #tpu.memory_space<vmem>>, vector<8x128xf32>,
    return
  }
  func.func @transform_0(%arg0: i32, %arg1: i32) -> (i32, i32) {
    %c0_i32 = arith.constant 0 : i32
    %c0_i32_0 = arith.constant 0 : i32
    return %arg0, %c0_i32 : i32, i32
  }
  func.func @transform_1(%arg0: i32, %arg1: i32) -> (i32, i32) {
    %c0_i32 = arith.constant 0 : i32
    %c0_i32_0 = arith.constant 0 : i32
    %c0_i32_1 = arith.constant 0 : i32
    return %c0_i32, %c0_i32_0 : i32, i32
  }
  func.func @transform_2(%arg0: i32, %arg1: i32) -> (i32, i32) {
    %c0_i32 = arith.constant 0 : i32
    %c0_i32_0 = arith.constant 0 : i32
    %c0_i32_1 = arith.constant 0 : i32
    return %c0_i32, %c0_i32_0 : i32, i32
  }
  func.func @transform_3(%arg0: i32, %arg1: i32) -> (i32, i32) {
    %c0_i32 = arith.constant 0 : i32
    %c0_i32_0 = arith.constant 0 : i32
    return %c0_i32, %arg1 : i32, i32
  }
  func.func @transform_4(%arg0: i32, %arg1: i32) -> (i32, i32) {
    %c0_i32 = arith.constant 0 : i32
    %c0_i32_0 = arith.constant 0 : i32
    return %c0_i32, %arg1 : i32, i32
  }
  func.func @transform_5(%arg0: i32, %arg1: i32) -> (i32, i32) {
    %c0_i32 = arith.constant 0 : i32
    return %arg0, %arg1 : i32, i32
  }
}

</mosaic_0001>

<bundles_post_ra>
// kernel: tpu_custom_call.1
= control target key start
LH: loop header
LB: loop body
LE: loop exit
PB: predicated region body
PF: predicated region fallthrough
CT: control target
= control target key end

     0   :  { %10 = vsyncpa [#allocation4], 0  ;;  %s601_s0 = inlined_call_operand.hbm [shape: bf16[8,128], index: 0, kind: input, shape index: {}]   ;;  %s602_s1 = inlined_call_operand.hbm [shape: bf16[128,128], index: 1, kind: input, shape index: {}]   ;;  %s603_s2 = inlined_call_operand.vmem [shape: f32[1,128], index: 2, kind: input, shape index: {}]   ;;  %s604_s3 = inlined_call_operand.hbm [shape: bf16[128,128], index: 3, kind: input, shape index: {}]   ;;  %s605_s4 = inlined_call_operand.vmem [shape: f32[1,128], index: 4, kind: input, shape index: {}]   ;;  %s606_s5 = inlined_call_operand.hbm [shape: f32[8,128], index: 5, kind: output, shape index: {}]  }
   0x1   :  { %11 = vsyncpa [#allocation7], 0 }
   0x2   :  { %12 = vsyncpa [#allocation5], 0  ;;  %s503_s18 = smov [#allocation6]   ;;  %s409_s22 = scalar_lea.hbm %s602_s1, 1024 }
   0x3   :  { %s28_s19 = sshll.u32 %s503_s18, 4  ;;  %p410_p0 = scmp.ne.s32.totalorder %s602_s1, %s409_s22  ;;  %s29_s19 = int_to_ptr.vmem [resolvable:$true] %s28_s19 }
   0x4   :  { %p413_p1 = scmp.lt.u32.totalorder %s409_s22, %s602_s1 }
   0x6   :  { %p415_p2 = pnand %p413_p1, %p410_p0 }
   0x8   :  { %418 = shalt.err (!%p415_p2)
}
   0x9   :  { %s419_s27 = scalar_lea.vmem %s29_s19, 1024  ;;  %p424_p4 = scmp.lt.s32.totalorder %s29_s19, %s29_s19 }
   0xa   :  { %p420_p3 = scmp.ne.s32.totalorder %s29_s19, %s419_s27  ;;  %p425_p5 = scmp.lt.s32.totalorder %s419_s27, %s419_s27 }
   0xc   :  { %p426_p6 = por %p425_p5, %p424_p4 }
   0xe   :  { %p427_p7 = pnand %p426_p6, %p420_p3 }
  0x10   :  { %430 = shalt.err (!%p427_p7)
}
  0x11   :  { %s504_s28 = smov 64   ;;  %s505_s29 = smov 4  }
  0x12   :  { %34 = dma.hbm_to_vmem [thread:$0]  %s602_s1, 1024, %s29_s19, [#allocation7], %s504_s28, %s504_s28, %s505_s29  }
  0x13   :  { %s506_s7 = smov [#allocation3]   ;;  %s507_s9 = smov [#allocation8]  }
  0x14   :  { %s19_s8 = sshll.u32 %s506_s7, 4  ;;  %s42_s10 = sshll.u32 %s507_s9, 4  ;;  %s20_s8 = int_to_ptr.vmem [resolvable:$true] %s19_s8  ;;  %s43_s10 = int_to_ptr.vmem [resolvable:$true] %s42_s10 }
  0x15   :  { %s431_s13 = scalar_lea.hbm %s601_s0, 64 }
  0x16   :  { %p432_p8 = scmp.ne.s32.totalorder %s601_s0, %s431_s13  ;;  %p435_p9 = scmp.lt.u32.totalorder %s431_s13, %s601_s0 }
  0x18   :  { %p437_p10 = pnand %p435_p9, %p432_p8 }
  0x1a   :  { %440 = shalt.err (!%p437_p10)
}
  0x1b   :  { %s441_s1 = scalar_lea.vmem %s20_s8, 64  ;;  %p446_p12 = scmp.lt.s32.totalorder %s20_s8, %s20_s8 }
  0x1c   :  { %p442_p11 = scmp.ne.s32.totalorder %s20_s8, %s441_s1  ;;  %p447_p13 = scmp.lt.s32.totalorder %s441_s1, %s441_s1 }
  0x1e   :  { %p448_p0 = por %p447_p13, %p446_p12 }
  0x20   :  { %p449_p1 = pnand %p448_p0, %p442_p11 }
  0x22   :  { %452 = shalt.err (!%p449_p1)
}
  0x23   :  { %22 = dma.hbm_to_vmem [thread:$0]  %s601_s0, 64, %s20_s8, [#allocation4]  }
  0x24   :  { %s453_s22 = scalar_lea.hbm %s604_s3, 1024 }
  0x25   :  { %p454_p2 = scmp.ne.s32.totalorder %s604_s3, %s453_s22  ;;  %p457_p3 = scmp.lt.u32.totalorder %s453_s22, %s604_s3 }
  0x27   :  { %p459_p4 = pnand %p457_p3, %p454_p2 }
  0x29   :  { %462 = shalt.err (!%p459_p4)
}
  0x2a   :  { %s463_s27 = scalar_lea.vmem %s43_s10, 1024  ;;  %p468_p6 = scmp.lt.s32.totalorder %s43_s10, %s43_s10 }
  0x2b   :  { %p464_p5 = scmp.ne.s32.totalorder %s43_s10, %s463_s27  ;;  %p469_p7 = scmp.lt.s32.totalorder %s463_s27, %s463_s27 }
  0x2d   :  { %p470_p8 = por %p469_p7, %p468_p6 }
  0x2f   :  { %p471_p9 = pnand %p470_p8, %p464_p5 }
  0x31   :  { %474 = shalt.err (!%p471_p9)
}
  0x32   :  { %48 = dma.hbm_to_vmem [thread:$0]  %s604_s3, 1024, %s43_s10, [#allocation7], %s504_s28, %s504_s28, %s505_s29  }
  0x33   :  { %497 = dma.done.wait [#allocation4], 64  }
  0x34   :  { %498 = vsyncadd [#allocation4], 4294967232 }
  0x35   :  { %499 = dma.done.wait [#allocation7], 2048  }
  0x36   :  { %500 = vsyncadd [#allocation7], 4294965248  ;;  %v508_v0 = vmov 0.0   ;;  %vm509_vm0 = vmmov 0   ;;  %v393_v1 = vld [vmem:[#allocation6] sm:$0xff]   ;;  %v394_v2 = vld [vmem:[#allocation6 + $0x8] sm:$0xff]  }
  0x37   :  { %345 = vmatprep.subr.bf16.mxu0 %v508_v0  ;;  %361 = vmatprep.mubr.msk.bf16.mxu0 %vm509_vm0, %v508_v0  ;;  %v395_v3 = vld [vmem:[#allocation6 + $0x10] sm:$0xff]   ;;  %v401_v4 = vld [vmem:[#allocation8] sm:$0xff]   ;;  %v396_v5 = vld [vmem:[#allocation6 + $0x18] sm:$0xff]   ;;  %s510_s7 = smov [#allocation9]  }
  0x38   :  { %365 = vmatprep.subr.bf16.mxu1 %v508_v0  ;;  %381 = vmatprep.mubr.msk.bf16.mxu1 %vm509_vm0, %v508_v0  ;;  %v402_v6 = vld [vmem:[#allocation8 + $0x8] sm:$0xff]   ;;  %v397_v7 = vld [vmem:[#allocation6 + $0x20] sm:$0xff]   ;;  %v403_v8 = vld [vmem:[#allocation8 + $0x10] sm:$0xff]   ;;  %s299_s8 = sshll.u32 %s510_s7, 4  ;;  %s300_s8 = int_to_ptr.vmem [resolvable:$true] %s299_s8 }
  0x39   :  { %346 = vmatpush3.bf16.msra.mxu0 %v393_v1  ;;  %366 = vmatpush3.bf16.msra.mxu1 %v401_v4  ;;  %v398_v9 = vld [vmem:[#allocation6 + $0x28] sm:$0xff]   ;;  %v404_v10 = vld [vmem:[#allocation8 + $0x18] sm:$0xff]   ;;  %v399_v11 = vld [vmem:[#allocation6 + $0x30] sm:$0xff]   ;;  %p480_p11 = scmp.lt.s32.totalorder %s300_s8, %s300_s8 }
  0x3a   :  { %347 = vmatprep.subr.bf16.mxu0 %v508_v0  ;;  %367 = vmatprep.subr.bf16.mxu1 %v508_v0  ;;  %v400_v12 = vld [vmem:[#allocation6 + $0x38] sm:$0xff]   ;;  %v405_v14 = vld [vmem:[#allocation8 + $0x20] sm:$0xff]   ;;  %v406_v15 = vld [vmem:[#allocation8 + $0x28] sm:$0xff]  }
  0x3b   :  { %v65_v13 = vld [vmem:[#allocation3] sm:$0xf]  ;;  %v407_v16 = vld [vmem:[#allocation8 + $0x30] sm:$0xff]   ;;  %v309_v18 = vld [vmem:[%s603_s2] ss:$0 sm:$0xff]  ;;  %s475_s2 = scalar_lea.vmem %s300_s8, 128 }
  0x3c   :  { %v408_v17 = vld [vmem:[#allocation8 + $0x38] sm:$0xff]   ;;  %p476_p10 = scmp.ne.s32.totalorder %s300_s8, %s475_s2  ;;  %p481_p12 = scmp.lt.s32.totalorder %s475_s2, %s475_s2 }
  0x3d   :  { %348 = vmatpush3.bf16.msra.mxu0 %v394_v2  ;;  %368 = vmatpush3.bf16.msra.mxu1 %v402_v6  ;;  %v318_v27 = vld [vmem:[%s605_s4] ss:$0 sm:$0xff] }
  0x3e   :  { %349 = vmatprep.subr.bf16.mxu0 %v508_v0  ;;  %369 = vmatprep.subr.bf16.mxu1 %v508_v0  ;;  %p482_p13 = por %p481_p12, %p480_p11 }
  0x40   :  { %p483_p0 = pnand %p482_p13, %p476_p10 }
  0x41   :  { %350 = vmatpush3.bf16.msra.mxu0 %v395_v3  ;;  %370 = vmatpush3.bf16.msra.mxu1 %v403_v8 }
  0x42   :  { %351 = vmatprep.subr.bf16.mxu0 %v508_v0  ;;  %371 = vmatprep.subr.bf16.mxu1 %v508_v0 }
  0x45   :  { %352 = vmatpush3.bf16.msra.mxu0 %v396_v5  ;;  %372 = vmatpush3.bf16.msra.mxu1 %v404_v10 }
  0x46   :  { %353 = vmatprep.subr.bf16.mxu0 %v508_v0  ;;  %373 = vmatprep.subr.bf16.mxu1 %v508_v0 }
  0x49   :  { %354 = vmatpush3.bf16.msra.mxu0 %v397_v7  ;;  %374 = vmatpush3.bf16.msra.mxu1 %v405_v14 }
  0x4a   :  { %355 = vmatprep.subr.bf16.mxu0 %v508_v0  ;;  %375 = vmatprep.subr.bf16.mxu1 %v508_v0 }
  0x4d   :  { %356 = vmatpush3.bf16.msra.mxu0 %v398_v9  ;;  %376 = vmatpush3.bf16.msra.mxu1 %v406_v15 }
  0x4e   :  { %357 = vmatprep.subr.bf16.mxu0 %v508_v0  ;;  %377 = vmatprep.subr.bf16.mxu1 %v508_v0 }
  0x51   :  { %358 = vmatpush3.bf16.msra.mxu0 %v399_v11  ;;  %378 = vmatpush3.bf16.msra.mxu1 %v407_v16 }
  0x52   :  { %359 = vmatprep.subr.bf16.mxu0 %v508_v0  ;;  %379 = vmatprep.subr.bf16.mxu1 %v508_v0 }
  0x55   :  { %360 = vmatpush3.bf16.msra.mxu0 %v400_v12  ;;  %380 = vmatpush3.bf16.msra.mxu1 %v408_v17 }
  0x58   :  { %362 = vmatmul.mubr.bf16.vlgmr.msra.gmra.mrb[0].mxu0 %v65_v13 }
 0x12b   :  { %v171_v19 = vpop.f32.mrb[0].mxu0 }
 0x12c   :  { %v172_v20 = vadd.f32 %v309_v18, %v171_v19  ;;  %v363_v21 = vpop.f32.mrb[1].mxu0 }
 0x12d   :  { %v174_v22 = vpop.f32.mrb[2].mxu0 }
 0x12e   :  { %v177_v23 = vmax.f32 %v172_v20, 0.0  ;;  %v364_v24 = vpop.f32.mrb[3].mxu0 }
 0x130   :  { %v178_v25 = vpack.c.bf16 %v177_v23, %v177_v23 }
 0x132   :  { %179 = vst [vmem:[#allocation2] sm:$0xf] %v178_v25 }
 0x139   :  { %v180_v26 = vld [vmem:[#allocation2] sm:$0xf] }
 0x13a   :  { %382 = vmatmul.mubr.bf16.vlgmr.msra.gmra.mrb[0].mxu1 %v180_v26 }
 0x20d   :  { %v286_v28 = vpop.f32.mrb[0].mxu1 }
 0x20e   :  { %v287_v29 = vadd.f32 %v318_v27, %v286_v28  ;;  %v383_v30 = vpop.f32.mrb[1].mxu1 }
 0x20f   :  { %v289_v31 = vpop.f32.mrb[2].mxu1 }
 0x210   :  { %292 = vst [vmem:[#allocation9] sm:$0xff] %v287_v29  ;;  %v384_v32 = vpop.f32.mrb[3].mxu1 }
 0x211   :  { %486 = shalt.err (!%p483_p0)
}
 0x212   :  { %s487_s4 = scalar_lea.hbm %s606_s5, 128 }
 0x213   :  { %p488_p1 = scmp.ne.s32.totalorder %s606_s5, %s487_s4  ;;  %p491_p2 = scmp.lt.u32.totalorder %s487_s4, %s606_s5 }
 0x215   :  { %p493_p3 = pnand %p491_p2, %p488_p1 }
 0x217   :  { %496 = shalt.err (!%p493_p3)
}
 0x218   :  { %302 = dma.vmem_to_hbm [thread:$0]  %s300_s8, 128, %s606_s5, [#allocation5]  }
 0x219   :  { %501 = dma.done.wait [#allocation5], 128  }
 0x21a   :  { %502 = vsyncadd [#allocation5], 4294967168 }
 0x21b   :  { %306 = vsyncpa [#allocation4], 1 }
 0x21c   :  { %307 = vsyncpa [#allocation7], 1 }
 0x21d   :  { %308 = vsyncpa [#allocation5], 1 }

</bundles_post_ra>
